<compile_context>
chip_gen: v6e
topology: v6e:2x2x1
jax: 0.10.0
libtpu: 0.0.40
codegen_flags: <defaults>
</compile_context>

<pallas_src>
import jax
import jax.numpy as jnp
from jax.experimental import pallas as pl
from jax.experimental.pallas import tpu as pltpu

IN_FEATURES = 28 * 28   # 784
HIDDEN = 50


def _disc_kernel(x_ref, w_ref, b_ref, o_ref):
    # x_ref : (TB, 784)  input rows (f32 or bf16); last tile may hold stale
    #                    rows beyond B -- those only feed dropped output rows.
    # w_ref : (1, 784)   folded weight row, f32, VMEM-resident across tiles
    # b_ref : (1, 1)     folded bias, f32, VMEM-resident across tiles
    # o_ref : (TB, 1)    output logits, f32
    x = x_ref[...].astype(jnp.float32)              # f32 accumulate
    w = w_ref[...]                                  # broadcasts over TB rows
    # Streaming mat-vec on the VPU + XLU lane reduction; MXU is not needed.
    acc = jnp.sum(x * w, axis=-1, keepdims=True)    # (TB, 1) f32
    o_ref[...] = (acc + b_ref[...]).astype(o_ref.dtype)


def _round_up(n, m):
    return ((n + m - 1) // m) * m


def _default_tile_and_vmem():
    """Per-TPU-generation batch tile and scoped-VMEM limit (bytes or None)."""
    try:
        kind = jax.devices()[0].device_kind.lower()
    except Exception:
        kind = ""
    if "v5" in kind:
        return 1024, None            # fits 16 MiB default scope
    if "v6" in kind:
        return 2048, None            # fits 32 MiB default scope
    if "v7" in kind or "7x" in kind or "tpu7" in kind:
        return 4096, 48 << 20        # raise scope; ~34 MiB of buffers, 64 MiB phys
    return 1024, None                # conservative fallback (v4 / unknown)


def discriminator_forward(x, w1, b1, w2, b2, *, tb=None, vmem_limit_bytes=None):
    """x: (B, 1, 28, 28) or (B, 784) (f32 or bf16).  Returns (B, 1) float32.

    w1: (784, 50)  b1: (1, 50)  w2: (50, 1)  b2: (1, 1)
    """
    x2d = x.reshape(-1, IN_FEATURES)
    B = x2d.shape[0]
    if B == 0:
        return jnp.zeros((0, 1), jnp.float32)

    # Exact fold of the two affine layers:  l2(l1(x)) = x @ (W1 W2) + (b1 W2 + b2).
    w_eff = (w1.astype(jnp.float32) @ w2.astype(jnp.float32)).reshape(1, IN_FEATURES)
    b_eff = (b1.astype(jnp.float32) @ w2.astype(jnp.float32)
             + b2.astype(jnp.float32)).reshape(1, 1)

    if tb is None:
        tb, auto_vmem = _default_tile_and_vmem()
        if vmem_limit_bytes is None:
            vmem_limit_bytes = auto_vmem

    # Tile: at least 2 tiles when B allows (keeps both v7x TCs busy), rows a
    # multiple of 8 (sublane granularity), never below 8.
    tb_eff = max(8, min(tb, _round_up(pl.cdiv(B, 2), 8)))
    grid = (pl.cdiv(B, tb_eff),)   # partial final block handled by Pallas

    out = pl.pallas_call(
        _disc_kernel,
        out_shape=jax.ShapeDtypeStruct((B, 1), jnp.float32),
        grid=grid,
        in_specs=[
            pl.BlockSpec((tb_eff, IN_FEATURES), lambda i: (i, 0)),  # x tile (pipelined)
            pl.BlockSpec((1, IN_FEATURES), lambda i: (0, 0)),       # resident folded W
            pl.BlockSpec((1, 1), lambda i: (0, 0)),                 # resident folded b
        ],
        out_specs=pl.BlockSpec((tb_eff, 1), lambda i: (i, 0)),
        compiler_params=pltpu.CompilerParams(
            dimension_semantics=("parallel",),   # shard batch tiles across TCs (v7x)
            vmem_limit_bytes=vmem_limit_bytes,
        ),
    )(x2d, w_eff, b_eff)

    return out


def init_params(key):
    """Deterministic init matching PyTorch nn.Linear default:
       U(-1/sqrt(fan_in), 1/sqrt(fan_in)) for weight and bias."""
    k1, k2, k3, k4 = jax.random.split(key, 4)
    bound1 = 1.0 / jnp.sqrt(IN_FEATURES)
    w1 = jax.random.uniform(k1, (IN_FEATURES, HIDDEN), jnp.float32, -bound1, bound1)
    b1 = jax.random.uniform(k2, (1, HIDDEN), jnp.float32, -bound1, bound1)
    bound2 = 1.0 / jnp.sqrt(HIDDEN)
    w2 = jax.random.uniform(k3, (HIDDEN, 1), jnp.float32, -bound2, bound2)
    b2 = jax.random.uniform(k4, (1, 1), jnp.float32, -bound2, bound2)
    return w1, b1, w2, b2


if __name__ == "__main__":
    key = jax.random.PRNGKey(0)
    kx, kp = jax.random.split(key)
    w1, b1, w2, b2 = init_params(kp)

    def ref_fwd(x):
        h = x.reshape(-1, IN_FEATURES).astype(jnp.float32) @ w1 + b1
        return h @ w2 + b2

    # Small example consistent with the module's forward: (B, 1, 28, 28).
    x = jax.random.normal(kx, (2, 1, 28, 28), jnp.float32)
    out = jax.block_until_ready(discriminator_forward(x, w1, b1, w2, b2))
    assert out.shape == (2, 1)
    assert jnp.allclose(out, ref_fwd(x), atol=5e-4, rtol=5e-4)

    # Ragged batch exercising the multi-tile grid + partial final block
    # (3 tiles of 16 rows, last tile only 8 valid rows, no padding pass).
    x2 = jax.random.normal(kx, (40, 1, 28, 28), jnp.float32)
    out2 = jax.block_until_ready(discriminator_forward(x2, w1, b1, w2, b2, tb=16))
    assert out2.shape == (40, 1)
    assert jnp.allclose(out2, ref_fwd(x2), atol=5e-4, rtol=5e-4)

    # bf16 input path (half HBM read traffic); accumulation stays f32.
    x3 = x2.astype(jnp.bfloat16)
    out3 = jax.block_until_ready(discriminator_forward(x3, w1, b1, w2, b2, tb=16))
    assert out3.shape == (40, 1)
    assert jnp.allclose(out3, ref_fwd(x3), atol=5e-3, rtol=5e-3)

    print("KERNEL_OK")
</pallas_src>

<mosaic_0001>
module attributes {stable_mosaic.version = 11 : i64} {
  func.func @_disc_kernel(%arg0: i32, %arg1: memref<8x784xf32, #tpu.memory_space<vmem>>, %arg2: memref<1x784xf32, #tpu.memory_space<vmem>>, %arg3: memref<1x1xf32, #tpu.memory_space<vmem>>, %arg4: memref<8x1xf32, #tpu.memory_space<vmem>>) attributes {dimension_semantics = [#tpu.dimension_semantics<parallel>], iteration_bounds = array<i64: 1>, scalar_prefetch = 0 : i64, scratch_operands = 0 : i64, tpu.core_type = #tpu.core_type<tc>, window_params = [{transform_indices = @transform_0, window_bounds = array<i64: 8, 784>}, {pipeline_mode = #tpu.pipeline_mode<synchronous>, transform_indices = @transform_1, window_bounds = array<i64: 1, 784>}, {pipeline_mode = #tpu.pipeline_mode<synchronous>, transform_indices = @transform_2, window_bounds = array<i64: 1, 1>}, {transform_indices = @transform_3, window_bounds = array<i64: 8, 1>}]} {
    %c0 = arith.constant 0 : index
    %c0_0 = arith.constant 0 : index
    %0 = vector.load %arg1[%c0, %c0_0] : memref<8x784xf32, #tpu.memory_space<vmem>>, vector<8x784xf32>
    %c0_1 = arith.constant 0 : index
    %c0_2 = arith.constant 0 : index
    %1 = vector.load %arg2[%c0_1, %c0_2] : memref<1x784xf32, #tpu.memory_space<vmem>>, vector<1x784xf32>
    %2 = vector.broadcast %1 : vector<1x784xf32> to vector<8x784xf32>
    %3 = arith.mulf %0, %2 : vector<8x784xf32>
    %cst = arith.constant dense<0.000000e+00> : vector<8xf32>
    %4 = vector.multi_reduction <add>, %3, %cst [1] : vector<8x784xf32> to vector<8xf32>
    %5 = vector.shape_cast %4 : vector<8xf32> to vector<8x1xf32>
    %c0_3 = arith.constant 0 : index
    %c0_4 = arith.constant 0 : index
    %6 = vector.load %arg3[%c0_3, %c0_4] : memref<1x1xf32, #tpu.memory_space<vmem>>, vector<1x1xf32>
    %7 = vector.broadcast %6 : vector<1x1xf32> to vector<8x1xf32>
    %8 = arith.addf %5, %7 : vector<8x1xf32>
    %c0_5 = arith.constant 0 : index
    %c0_6 = arith.constant 0 : index
    %9 = vector.load %arg4[%c0_5, %c0_6] : memref<8x1xf32, #tpu.memory_space<vmem>>, vector<8x1xf32>
    tpu.vector_store %arg4[%c0_5, %c0_6], %8 {strides = array<i32>} : memref<8x1xf32, #tpu.memory_space<vmem>>, vector<8x1xf32>,
    return
  }
  func.func @transform_0(%arg0: i32) -> (i32, i32) {
    %c0_i32 = arith.constant 0 : i32
    %c0_i32_0 = arith.constant 0 : i32
    return %arg0, %c0_i32 : i32, i32
  }
  func.func @transform_1(%arg0: i32) -> (i32, i32) {
    %c0_i32 = arith.constant 0 : i32
    %c0_i32_0 = arith.constant 0 : i32
    %c0_i32_1 = arith.constant 0 : i32
    return %c0_i32, %c0_i32_0 : i32, i32
  }
  func.func @transform_2(%arg0: i32) -> (i32, i32) {
    %c0_i32 = arith.constant 0 : i32
    %c0_i32_0 = arith.constant 0 : i32
    %c0_i32_1 = arith.constant 0 : i32
    return %c0_i32, %c0_i32_0 : i32, i32
  }
  func.func @transform_3(%arg0: i32) -> (i32, i32) {
    %c0_i32 = arith.constant 0 : i32
    %c0_i32_0 = arith.constant 0 : i32
    return %arg0, %c0_i32 : i32, i32
  }
}

</mosaic_0001>

<bundles_post_ra>
// kernel: tpu_custom_call.1
= control target key start
LH: loop header
LB: loop body
LE: loop exit
PB: predicated region body
PF: predicated region fallthrough
CT: control target
= control target key end

     0   :  { %s421_s0 = inlined_call_operand.hbm [shape: f32[2,784], index: 0, kind: input, shape index: {}]   ;;  %s422_s1 = inlined_call_operand.hbm [shape: f32[1,784], index: 1, kind: input, shape index: {}]   ;;  %s423_s2 = inlined_call_operand.<no memory space> [shape: f32[1,1], index: 2, kind: input, shape index: {}]   ;;  %s424_s3 = inlined_call_operand.vmem [shape: f32[2,1], index: 3, kind: output, shape index: {}]  }
   0x1   :  { %v8_v0 = vstv %s423_s2 }
   0x2   :  { %9 = vst [vmem:[#allocation2] sm:$0x1] %v8_v0 }
   0x3   :  { %10 = vsyncpa [#allocation4], 0 }
   0x4   :  { %11 = vsyncpa [#allocation6], 0 }
   0x5   :  { %16 = vsyncadd [#allocation4], 672  ;;  %s366_s14 = smov [#allocation3]  }
   0x6   :  { %s17_s15 = sshll.u32 %s366_s14, 4  ;;  %s18_s15 = int_to_ptr.vmem [resolvable:$true] %s17_s15 }
   0x7   :  { %s330_s16 = scalar_lea.vmem %s18_s15, 224  ;;  %s334_s17 = scalar_lea.vmem %s18_s15, 896 }
   0x8   :  { %p331_p0 = scmp.ne.s32.totalorder %s18_s15, %s330_s16  ;;  %p335_p1 = scmp.lt.s32.totalorder %s18_s15, %s18_s15 }
   0x9   :  { %p336_p2 = scmp.lt.s32.totalorder %s334_s17, %s330_s16 }
   0xb   :  { %p337_p3 = por %p336_p2, %p335_p1 }
   0xd   :  { %p338_p4 = pnand %p337_p3, %p331_p0 }
   0xf   :  { %341 = shalt.err (!%p338_p4)
}
  0x10   :  { %s367_s18 = smov 224   ;;  %s368_s19 = smov 14  }
  0x11   :  { %23 = dma.hbm_to_vmem [thread:$0]  %s421_s0, 224, %s18_s15, [#allocation4], %s367_s18, %s367_s18, %s368_s19  }
  0x12   :  { %s369_s2 = smov [#allocation5]  }
  0x13   :  { %s30_s22 = sshll.u32 %s369_s2, 4  ;;  %s31_s22 = int_to_ptr.vmem [resolvable:$true] %s30_s22 }
  0x14   :  { %s350_s23 = scalar_lea.vmem %s31_s22, 112  ;;  %s354_s24 = scalar_lea.vmem %s31_s22, 128 }
  0x15   :  { %p351_p5 = scmp.ne.s32.totalorder %s31_s22, %s350_s23  ;;  %p355_p6 = scmp.lt.s32.totalorder %s31_s22, %s31_s22 }
  0x16   :  { %p356_p7 = scmp.lt.s32.totalorder %s354_s24, %s350_s23 }
  0x18   :  { %p357_p8 = por %p356_p7, %p355_p6 }
  0x1a   :  { %p358_p9 = pnand %p357_p8, %p351_p5 }
  0x1c   :  { %361 = shalt.err (!%p358_p9)
}
  0x1d   :  { %33 = dma.hbm_to_vmem [thread:$0]  %s422_s1, 112, %s31_s22, [#allocation6]  }
  0x1e   :  { %362 = dma.done.wait [#allocation4], 896  }
  0x1f   :  { %363 = vsyncadd [#allocation4], 4294966400 }
  0x20   :  { %364 = dma.done.wait [#allocation6], 112  }
  0x21   :  { %365 = vsyncadd [#allocation6], 4294967184  ;;  %v52_v1 = vlaneseq  ;;  %v370_v2 = vmov 1983009808   ;;  %v50_v13 = vld [vmem:[#allocation5] sm:$0x7f] }
  0x22   :  { %v85_v3 = vunpack.c.l.s4 %v370_v2  ;;  %v42_v30 = vld [vmem:[#allocation3] sm:$0xff]  ;;  %v43_v31 = vld [vmem:[#allocation3 + $0x8] sm:$0x3f]  ;;  %v44_v36 = vld [vmem:[#allocation3 + $0xe] sm:$0xff]  ;;  %vm258_vm0 = vcmask 130048   ;;  %vm271_vm1 = vcmask 7168  }
  0x23   :  { %v53_v4 = vshrl.u32 %v52_v1, 7  ;;  %v46_v37 = vld [vmem:[#allocation3 + $0x1c] sm:$0xff]  ;;  %v48_v38 = vld [vmem:[#allocation3 + $0x2a] sm:$0xff]  ;;  %v45_v42 = vld [vmem:[#allocation3 + $0x16] sm:$0x3f] }
  0x24   :  { %v86_v5 = vunpack.c.0.s8 %v85_v3  ;;  %v47_v43 = vld [vmem:[#allocation3 + $0x24] sm:$0x3f]  ;;  %v49_v44 = vld [vmem:[#allocation3 + $0x32] sm:$0x3f] }
  0x25   :  { %v54_v6 = vsub.s32 0, %v53_v4  ;;  %v58_v7 = vsub.s32 1, %v53_v4  ;;  %v62_v8 = vsub.s32 2, %v53_v4  ;;  %v66_v9 = vsub.s32 3, %v53_v4 }
  0x26   :  { %v70_v10 = vsub.s32 4, %v53_v4  ;;  %v74_v11 = vsub.s32 5, %v53_v4  ;;  %v78_v12 = vsub.s32 6, %v53_v4  ;;  %v400_v14 = vsub.s32 %v86_v5, %v53_v4 }
  0x27   :  { %v55_v15 = vrot.slane %v50_v13, %v54_v6  ;;  %v59_v16 = vrot.slane %v50_v13, %v58_v7  ;;  %v63_v17 = vrot.slane %v50_v13, %v62_v8  ;;  %v67_v18 = vrot.slane %v50_v13, %v66_v9 }
  0x28   :  { %v71_v19 = vrot.slane %v50_v13, %v70_v10  ;;  %v75_v20 = vrot.slane %v50_v13, %v74_v11  ;;  %v79_v21 = vrot.slane %v50_v13, %v78_v12 }
  0x29   :  { %v80_v22 = vcombine.low %v55_v15, %v59_v16  ;;  %v81_v23 = vcombine.high %v55_v15, %v59_v16  ;;  %v82_v24 = vcombine.low %v63_v17, %v67_v18  ;;  %v83_v25 = vcombine.high %v63_v17, %v67_v18 }
  0x2a   :  { %v116_v26 = vcombine.low %v71_v19, %v75_v20  ;;  %v117_v27 = vcombine.high %v71_v19, %v75_v20  ;;  %v118_v28 = vcombine.high %v79_v21, %v79_v21  ;;  %v139_v29 = vrot.slane %v79_v21, %v400_v14 }
  0x2b   :  { %v90_v32 = vrot.slane %v80_v22, %v400_v14  ;;  %v97_v33 = vrot.slane %v81_v23, %v400_v14  ;;  %v104_v34 = vrot.slane %v82_v24, %v400_v14  ;;  %v111_v35 = vrot.slane %v83_v25, %v400_v14 }
  0x2c   :  { %v125_v39 = vrot.slane %v116_v26, %v400_v14  ;;  %v132_v40 = vrot.slane %v117_v27, %v400_v14  ;;  %v146_v41 = vrot.slane %v118_v28, %v400_v14  ;;  %v316_v28 = vld [vmem:[#allocation2] ss:$0 sm:$0xff] }
  0x2d   :  { %v112_v45 = vcombine.low %v90_v32, %v104_v34  ;;  %v113_v46 = vcombine.high %v90_v32, %v104_v34  ;;  %v114_v47 = vcombine.low %v97_v33, %v111_v35  ;;  %v115_v48 = vcombine.high %v97_v33, %v111_v35 }
  0x2e   :  { %v147_v49 = vcombine.low %v125_v39, %v139_v29  ;;  %v148_v50 = vcombine.high %v125_v39, %v139_v29  ;;  %v149_v51 = vcombine.low %v132_v40, %v146_v41  ;;  %v150_v52 = vcombine.high %v132_v40, %v146_v41 }
  0x2f   :  { %v159_v53 = vmul.f32 %v112_v45, %v42_v30  ;;  %v161_v54 = vmul.f32 %v113_v46, %v44_v36  ;;  %v163_v55 = vmul.f32 %v114_v47, %v46_v37  ;;  %v165_v56 = vmul.f32 %v115_v48, %v48_v38 }
  0x30   :  { %v160_v57 = vmul.f32 %v147_v49, %v43_v31  ;;  %v162_v58 = vmul.f32 %v148_v50, %v45_v42  ;;  %v164_v59 = vmul.f32 %v149_v51, %v47_v43  ;;  %v166_v60 = vmul.f32 %v150_v52, %v49_v44 }
  0x31   :  { %v175_v61 = vcombine.low %v159_v53, %v161_v54  ;;  %v176_v62 = vcombine.high %v159_v53, %v161_v54  ;;  %v177_v63 = vcombine.low %v163_v55, %v165_v56  ;;  %v178_v0 = vcombine.high %v163_v55, %v165_v56 }
  0x32   :  { %v211_v1 = vcombine.low %v160_v57, %v162_v58  ;;  %v212_v2 = vcombine.high %v160_v57, %v162_v58  ;;  %v213_v3 = vcombine.low %v164_v59, %v166_v60  ;;  %v214_v4 = vcombine.high %v164_v59, %v166_v60 }
  0x33   :  { %v185_v5 = vrot.slane %v175_v61, %v400_v14  ;;  %v192_v6 = vrot.slane %v176_v62, %v400_v14  ;;  %v199_v7 = vrot.slane %v177_v63, %v400_v14  ;;  %v206_v8 = vrot.slane %v178_v0, %v400_v14 }
  0x34   :  { %v221_v9 = vrot.slane %v211_v1, %v400_v14  ;;  %v235_v13 = vrot.slane %v213_v3, %v400_v14  ;;  %v228_v15 = vrot.slane %v212_v2, %v400_v14  ;;  %v242_v16 = vrot.slane %v214_v4, %v400_v14 }
  0x35   :  { %v207_v10 = vcombine.low %v185_v5, %v199_v7  ;;  %v208_v11 = vcombine.high %v185_v5, %v199_v7  ;;  %v209_v12 = vcombine.low %v192_v6, %v206_v8  ;;  %v210_v17 = vcombine.high %v192_v6, %v206_v8 }
  0x36   :  { %v243_v19 = vcombine.low %v221_v9, %v235_v13  ;;  %v245_v21 = vcombine.low %v228_v15, %v242_v16  ;;  %v244_v22 = vcombine.high %v221_v9, %v235_v13 }
  0x37   :  { %v253_v18 = vadd.f32 %v208_v11, %v207_v10 }
  0x38   :  { %v259_v25 = vsel %vm258_vm0, %v245_v21, 0.0 }
  0x39   :  { %v254_v20 = vadd.f32 %v253_v18, %v209_v12 }
  0x3b   :  { %v255_v23 = vadd.f32 %v254_v20, %v210_v17 }
  0x3d   :  { %v256_v24 = vadd.f32 %v255_v23, %v243_v19 }
  0x3f   :  { %v257_v26 = vadd.f32 %v256_v24, %v244_v22 }
  0x41   :  { %v260_v27 = vadd.f32 %v259_v25, %v257_v26 }
  0x43   :  { %261 = vadd.xlane.f32.xlu0 %v260_v27 }
  0xcc   :  { %v262_v29 = vpop.xlane.xlu0 %261 }
  0xcd   :  { %v270_v30 = vadd.f32 %v316_v28, %v262_v29 }
  0xcf   :  { %272 = vst.msk [vmem:[#allocation7] sm:$0xff] %vm271_vm1, %v270_v30 }
  0xd6   :  { %v291_v31 = vld [vmem:[#allocation7] sm:$0x3] }
  0xd7   :  { %292 = vst [vmem:[%s424_s3] sm:$0x3] %v291_v31 }
  0xd8   :  { %310 = vsyncpa [#allocation4], 1 }
  0xd9   :  { %311 = vsyncpa [#allocation6], 1 }

</bundles_post_ra>
